<compile_context>
chip_gen: v6e
topology: v6e:2x2x1
jax: 0.10.0
libtpu: 0.0.40
codegen_flags: <defaults>
</compile_context>

<pallas_src>
import functools

import jax
import jax.numpy as jnp
from jax import lax
from jax.experimental import pallas as pl
from jax.experimental.pallas import tpu as pltpu


def _round_up(x, m):
    return ((x + m - 1) // m) * m


def _default_num_cores():
    # Only v7x has 2 TensorCores per chip; everything else is single-TC.
    try:
        kind = jax.devices()[0].device_kind.lower()
    except Exception:
        return 1
    return 2 if "v7" in kind else 1


def _choose_tile_rows(batch, classes, itemsize, n_buffers):
    # ~12 MiB per pipeline stage: n_buffers x logits tile rows plus ~8 bytes /
    # element reserved for the int32 iota/cand temporaries of the in-tile
    # argmax (conservative; Mosaic usually fuses these per-vreg).  Stays well
    # inside the 32 MiB scoped-VMEM limit set below on every generation.
    budget = 12 * 1024 * 1024
    per_row = classes * (n_buffers * itemsize + 8)
    tb = budget // max(per_row, 1)
    tb = min(tb, 1024)                    # past ~512 rows the DMA roofline is flat
    tb = min(tb, _round_up(batch, 8))     # don't exceed the (padded) batch
    tb = max(8, (tb // 8) * 8)
    return int(tb)


def _topk_mixup_kernel(logits_ref, labels_ref, out_ref, *,
                       batch, tile_rows, tiles_per_core, num_cores):
    if num_cores > 1:
        c = pl.program_id(0)                    # core axis (CORE_PARALLEL)
        i = pl.program_id(1)                    # batch-tile axis (reduction)
        virtual_tile = c * tiles_per_core + i   # UNclamped tile index
    else:
        i = pl.program_id(0)
        virtual_tile = i

    @pl.when(i == 0)
    def _init():
        out_ref[...] = jnp.zeros_like(out_ref)

    logits = logits_ref[...]                              # (TB, F), native dtype
    tb, f = logits.shape

    # First-occurrence argmax along classes (pure VPU/XLU, no MXU); matches
    # torch.max's first-index tie-breaking.
    col = lax.broadcasted_iota(jnp.int32, (tb, f), 1)
    row_max = jnp.max(logits, axis=1, keepdims=True)      # (TB, 1)
    cand = jnp.where(logits == row_max, col, f)           # (TB, F) int32
    predicted = jnp.min(cand, axis=1, keepdims=True)      # (TB, 1) int32

    # Mask rows outside the real batch (partial last tile; on the 2-core split
    # also the clamped "virtual" tiles).
    row = lax.broadcasted_iota(jnp.int32, (tb, 1), 0)
    valid = (virtual_tile * tile_rows + row) < batch      # (TB, 1) bool

    # labels_ref is (TB, 2): lane 0 = labels, lane 1 = labels[index].
    hits = jnp.where(valid & (predicted == labels_ref[...]), 1.0, 0.0)  # (TB, 2)

    # The output block is the accumulator: block index is constant across the
    # reduction axis, so it stays resident in VMEM and is written back to HBM
    # once per core.  Per-step cost: one element-wise add.
    out_ref[...] += hits[None]


def topk_mixup_accuracy(logits, labels, index, lam, k: int = 1,
                        tile_rows=None, num_cores=None, logits_buffers=None):
    if k > 1:
        raise NotImplementedError
    assert logits.ndim == 2, "(B, F)"
    assert labels.ndim == 1, "(B,)"
    assert logits.shape[0] == labels.shape[0] == index.shape[0]

    batch, classes = logits.shape
    itemsize = jnp.dtype(logits.dtype).itemsize
    if num_cores is None:
        num_cores = _default_num_cores()
    n_buf = 2 if logits_buffers is None else max(2, int(logits_buffers))
    if tile_rows is None:
        tile_rows = _choose_tile_rows(batch, classes, itemsize, n_buf)

    total_tiles = pl.cdiv(batch, tile_rows)
    num_cores = max(1, min(int(num_cores), total_tiles))
    tiles_per_core = pl.cdiv(total_tiles, num_cores)

    labels_i32 = labels.astype(jnp.int32)
    # Glue: the labels[index] gather (B elements) stays in plain JAX; pack both
    # label columns into one (B, 2) operand -> one narrow DMA per tile.
    labels_pair = jnp.stack(
        [labels_i32, labels_i32[index.astype(jnp.int32)]], axis=1)     # (B, 2)

    logits_spec_kwargs = {}
    if logits_buffers is not None and int(logits_buffers) != 2:
        logits_spec_kwargs["pipeline_mode"] = pl.Buffered(int(logits_buffers))

    if num_cores > 1:
        grid = (num_cores, tiles_per_core)
        dim_sem = (pltpu.CORE_PARALLEL, pltpu.ARBITRARY)

        def tile_map(c, i):
            # Clamp virtual tiles of the core split onto a valid block; their
            # rows are masked out inside the kernel.
            return (jnp.minimum(c * tiles_per_core + i, total_tiles - 1), 0)

        out_map = lambda c, i: (c, 0, 0)
    else:
        grid = (total_tiles,)
        dim_sem = (pltpu.ARBITRARY,)
        tile_map = lambda i: (i, 0)
        out_map = lambda i: (0, 0, 0)

    kernel = functools.partial(
        _topk_mixup_kernel,
        batch=batch, tile_rows=tile_rows,
        tiles_per_core=tiles_per_core, num_cores=num_cores)

    partials = pl.pallas_call(
        kernel,
        out_shape=jax.ShapeDtypeStruct((num_cores, tile_rows, 2), jnp.float32),
        grid_spec=pltpu.PrefetchScalarGridSpec(
            num_scalar_prefetch=0,
            grid=grid,
            in_specs=[
                pl.BlockSpec((tile_rows, classes), tile_map,
                             **logits_spec_kwargs),        # logits (native dtype)
                pl.BlockSpec((tile_rows, 2), tile_map),     # [labels, labels[index]]
            ],
            out_specs=pl.BlockSpec((1, tile_rows, 2), out_map),
        ),
        compiler_params=pltpu.CompilerParams(
            dimension_semantics=dim_sem,
            vmem_limit_bytes=32 * 1024 * 1024),
        cost_estimate=pl.CostEstimate(
            flops=4 * batch * classes,
            transcendentals=0,
            bytes_accessed=batch * classes * itemsize + batch * 2 * 4
            + num_cores * tile_rows * 2 * 4),
    )(logits, labels_pair)

    lam_f = jnp.asarray(lam, dtype=jnp.float32)
    plain_total = jnp.sum(partials[..., 0])
    mixed_total = jnp.sum(partials[..., 1])
    correct = lam_f * plain_total + (1.0 - lam_f) * mixed_total
    return correct * 0.01


def _reference(logits, labels, index, lam):
    predicted = jnp.argmax(logits, axis=1)
    correct = lam * jnp.sum(predicted == labels).astype(jnp.float32) + (
        1.0 - lam
    ) * jnp.sum(predicted == labels[index]).astype(jnp.float32)
    return correct * 0.01


if __name__ == "__main__":
    key = jax.random.PRNGKey(0)
    k_logits, k_labels, k_index = jax.random.split(key, 3)

    B, F = 20, 128
    logits = jax.random.normal(k_logits, (B, F), dtype=jnp.float32)
    labels = jax.random.randint(k_labels, (B,), 0, F, dtype=jnp.int32)
    index = jax.random.permutation(k_index, B).astype(jnp.int32)
    lam = 0.7

    want = _reference(logits, labels, index, lam)

    got = jax.block_until_ready(topk_mixup_accuracy(logits, labels, index, lam))
    assert jnp.allclose(got, want, atol=1e-6), (got, want)

    # Tiny tiles: multi-tile accumulation + partial-tile mask (+ clamped
    # virtual tiles of the core split on 2-TC chips).
    got_small = jax.block_until_ready(
        topk_mixup_accuracy(logits, labels, index, lam, tile_rows=8))
    assert jnp.allclose(got_small, want, atol=1e-6), (got_small, want)

    # Native bf16 logits stay bf16 on the wire (no wrapper upcast).
    logits_bf16 = logits.astype(jnp.bfloat16)
    want_bf16 = _reference(logits_bf16, labels, index, lam)
    got_bf16 = jax.block_until_ready(
        topk_mixup_accuracy(logits_bf16, labels, index, lam))
    assert jnp.allclose(got_bf16, want_bf16, atol=1e-6), (got_bf16, want_bf16)

    print("KERNEL_OK")
</pallas_src>

<mosaic_0001>
module attributes {stable_mosaic.version = 11 : i64} {
  func.func @_topk_mixup_kernel(%arg0: i32, %arg1: memref<24x128xf32, #tpu.memory_space<vmem>>, %arg2: memref<24x2xi32, #tpu.memory_space<vmem>>, %arg3: memref<1x24x2xf32, #tpu.memory_space<vmem>>) attributes {dimension_semantics = [#tpu.dimension_semantics<arbitrary>], iteration_bounds = array<i64: 1>, scalar_prefetch = 0 : i64, scratch_operands = 0 : i64, tpu.core_type = #tpu.core_type<tc>, window_params = [{transform_indices = @transform_0, window_bounds = array<i64: 24, 128>}, {transform_indices = @transform_1, window_bounds = array<i64: 24, 2>}, {pipeline_mode = #tpu.pipeline_mode<synchronous>, transform_indices = @transform_2, window_bounds = array<i64: 1, 24, 2>}]} {
    %c0_i32 = arith.constant 0 : i32
    %0 = arith.cmpi eq, %arg0, %c0_i32 : i32
    %1 = arith.extui %0 : i1 to i32
    %c0_i32_0 = arith.constant 0 : i32
    %2 = arith.cmpi ne, %1, %c0_i32_0 : i32
    scf.if %2 {
      %cst_13 = arith.constant 0.000000e+00 : f32
      %31 = vector.broadcast %cst_13 : f32 to vector<1x24x2xf32>
      %c0_14 = arith.constant 0 : index
      %c0_15 = arith.constant 0 : index
      %c0_16 = arith.constant 0 : index
      %32 = vector.load %arg3[%c0_14, %c0_15, %c0_16] : memref<1x24x2xf32, #tpu.memory_space<vmem>>, vector<1x24x2xf32>
      tpu.vector_store %arg3[%c0_14, %c0_15, %c0_16], %31 {strides = array<i32>} : memref<1x24x2xf32, #tpu.memory_space<vmem>>, vector<1x24x2xf32>,
    } else {
    }
    %c0 = arith.constant 0 : index
    %c0_1 = arith.constant 0 : index
    %3 = vector.load %arg1[%c0, %c0_1] : memref<24x128xf32, #tpu.memory_space<vmem>>, vector<24x128xf32>
    %4 = tpu.iota {dimensions = array<i32: 1>} : vector<24x128xi32>
    %cst = arith.constant dense<0xFF800000> : vector<24xf32>
    %5 = vector.multi_reduction <maximumf>, %3, %cst [1] : vector<24x128xf32> to vector<24xf32>
    %6 = vector.shape_cast %5 : vector<24xf32> to vector<24x1xf32>
    %7 = vector.broadcast %6 : vector<24x1xf32> to vector<24x128xf32>
    %8 = arith.cmpf oeq, %3, %7 : vector<24x128xf32>
    %c128_i32 = arith.constant 128 : i32
    %9 = vector.broadcast %c128_i32 : i32 to vector<24x128xi32>
    %10 = arith.select %8, %4, %9 : vector<24x128xi1>, vector<24x128xi32>
    %cst_2 = arith.constant dense<2147483647> : vector<24xi32>
    %11 = vector.multi_reduction <minsi>, %10, %cst_2 [1] : vector<24x128xi32> to vector<24xi32>
    %12 = vector.shape_cast %11 : vector<24xi32> to vector<24x1xi32>
    %13 = tpu.iota {dimensions = array<i32: 0>} : vector<24x1xi32>
    %c24_i32 = arith.constant 24 : i32
    %14 = arith.muli %arg0, %c24_i32 : i32
    %15 = vector.broadcast %14 : i32 to vector<24x1xi32>
    %16 = arith.addi %15, %13 : vector<24x1xi32>
    %c20_i32 = arith.constant 20 : i32
    %17 = vector.broadcast %c20_i32 : i32 to vector<24x1xi32>
    %18 = arith.cmpi slt, %16, %17 : vector<24x1xi32>
    %c0_3 = arith.constant 0 : index
    %c0_4 = arith.constant 0 : index
    %19 = vector.load %arg2[%c0_3, %c0_4] : memref<24x2xi32, #tpu.memory_space<vmem>>, vector<24x2xi32>
    %20 = vector.broadcast %12 : vector<24x1xi32> to vector<24x2xi32>
    %21 = arith.cmpi eq, %20, %19 : vector<24x2xi32>
    %22 = vector.broadcast %18 : vector<24x1xi1> to vector<24x2xi1>
    %23 = arith.andi %22, %21 : vector<24x2xi1>
    %cst_5 = arith.constant 1.000000e+00 : f32
    %cst_6 = arith.constant 0.000000e+00 : f32
    %24 = vector.broadcast %cst_5 : f32 to vector<24x2xf32>
    %25 = vector.broadcast %cst_6 : f32 to vector<24x2xf32>
    %26 = arith.select %23, %24, %25 : vector<24x2xi1>, vector<24x2xf32>
    %c0_7 = arith.constant 0 : index
    %c0_8 = arith.constant 0 : index
    %c0_9 = arith.constant 0 : index
    %27 = vector.load %arg3[%c0_7, %c0_8, %c0_9] : memref<1x24x2xf32, #tpu.memory_space<vmem>>, vector<1x24x2xf32>
    %28 = vector.shape_cast %26 : vector<24x2xf32> to vector<1x24x2xf32>
    %29 = arith.addf %27, %28 : vector<1x24x2xf32>
    %c0_10 = arith.constant 0 : index
    %c0_11 = arith.constant 0 : index
    %c0_12 = arith.constant 0 : index
    %30 = vector.load %arg3[%c0_10, %c0_11, %c0_12] : memref<1x24x2xf32, #tpu.memory_space<vmem>>, vector<1x24x2xf32>
    tpu.vector_store %arg3[%c0_10, %c0_11, %c0_12], %29 {strides = array<i32>} : memref<1x24x2xf32, #tpu.memory_space<vmem>>, vector<1x24x2xf32>,
    return
  }
  func.func @transform_0(%arg0: i32) -> (i32, i32) {
    %c0_i32 = arith.constant 0 : i32
    %c0_i32_0 = arith.constant 0 : i32
    return %arg0, %c0_i32 : i32, i32
  }
  func.func @transform_1(%arg0: i32) -> (i32, i32) {
    %c0_i32 = arith.constant 0 : i32
    %c0_i32_0 = arith.constant 0 : i32
    return %arg0, %c0_i32 : i32, i32
  }
  func.func @transform_2(%arg0: i32) -> (i32, i32, i32) {
    %c0_i32 = arith.constant 0 : i32
    %c0_i32_0 = arith.constant 0 : i32
    %c0_i32_1 = arith.constant 0 : i32
    %c0_i32_2 = arith.constant 0 : i32
    return %c0_i32, %c0_i32_0, %c0_i32_1 : i32, i32, i32
  }
}

</mosaic_0001>

<bundles_post_ra>
// kernel: tpu_custom_call.1
= control target key start
LH: loop header
LB: loop body
LE: loop exit
PB: predicated region body
PF: predicated region fallthrough
CT: control target
= control target key end

     0   :  { %v22_v3 = vlaneseq  ;;  %vm15_vm3 = vcmask 15360   ;;  %v123_v17 = vmov 0.0   ;;  %s190_s0 = inlined_call_operand.vmem [shape: f32[20,128], index: 0, kind: input, shape index: {}]   ;;  %s191_s2 = inlined_call_operand.vmem [shape: f32[1,24,2], index: 2, kind: output, shape index: {}]   ;;  %s192_s1 = inlined_call_operand.vmem [shape: s32[20,2], index: 1, kind: input, shape index: {}]  }
   0x1   :  { %v21_v0 = vld [vmem:[%s190_s0 + $0x10] sm:$0xff]  ;;  %v20_v1 = vld [vmem:[%s190_s0 + $0x8] sm:$0xff]  ;;  %v19_v2 = vld [vmem:[%s190_s0] sm:$0xff]  ;;  %18 = vst.msk [vmem:[%s191_s2 + $0x10] sm:$0xff] %vm15_vm3, %v123_v17 }
   0x2   :  { %28 = vmax.xlane.f32.xlu0 %v21_v0  ;;  %26 = vmax.xlane.f32.xlu1 %v20_v1  ;;  %v23_v4 = vand.u32 127, %v22_v3  ;;  %16 = vst.msk [vmem:[%s191_s2] sm:$0xff] %vm15_vm3, %v123_v17  ;;  %17 = vst.msk [vmem:[%s191_s2 + $0x8] sm:$0xff] %vm15_vm3, %v123_v17  ;;  %v79_v30 = vshrl.u32 %v22_v3, 7  ;;  %v92_v38 = vld [vmem:[%s192_s1 + $0x10] sm:$0xff]  ;;  %v91_v47 = vld [vmem:[%s192_s1 + $0x8] sm:$0xff] }
   0x3   :  { %v90_v48 = vld [vmem:[%s192_s1] sm:$0xff] }
   0x4   :  { %v81_v32 = vadd.s32 16, %v79_v30 }
   0x6   :  { %24 = vmax.xlane.f32.xlu0 %v19_v2  ;;  %vm89_vm7 = vcmp.lt.s32.totalorder %v81_v32, 20 }
   0x8   :  { %v110_v44 = vld [vmem:[%s191_s2 + $0x10] sm:$0xff] }
   0x9   :  { %v109_v53 = vld [vmem:[%s191_s2 + $0x8] sm:$0xff]  ;;  %v108_v54 = vld [vmem:[%s191_s2] sm:$0xff] }
  0x8b   :  { %v29_v5 = vpop.xlane.xlu0 %28  ;;  %v27_v6 = vpop.xlane.xlu1 %26 }
  0x8c   :  { %vm32_vm0 = vcmp.eq.f32.partialorder %v21_v0, %v29_v5  ;;  %vm31_vm1 = vcmp.eq.f32.partialorder %v20_v1, %v27_v6 }
  0x8d   :  { %v35_v7 = vsel %vm32_vm0, %v23_v4, 128  ;;  %v34_v8 = vsel %vm31_vm1, %v23_v4, 128 }
  0x8e   :  { %v65_v9 = vshra.s32 %v35_v7, 16  ;;  %v51_v10 = vshra.s32 %v34_v8, 16  ;;  %v64_v18 = vand.u32 65535, %v35_v7  ;;  %v50_v19 = vand.u32 65535, %v34_v8 }
  0x8f   :  { %v25_v11 = vpop.xlane.xlu0 %24 }
  0x90   :  { %vm30_vm2 = vcmp.eq.f32.partialorder %v19_v2, %v25_v11  ;;  %v67_v12 = vcvt.s32.f32 %v65_v9  ;;  %v53_v14 = vcvt.s32.f32 %v51_v10  ;;  %v66_v22 = vcvt.s32.f32 %v64_v18 }
  0x91   :  { %v33_v13 = vsel %vm30_vm2, %v23_v4, 128  ;;  %v52_v26 = vcvt.s32.f32 %v50_v19 }
  0x92   :  { %68 = vmin.xlane.f32.xlu1 %v67_v12  ;;  %v37_v15 = vshra.s32 %v33_v13, 16  ;;  %v36_v20 = vand.u32 65535, %v33_v13 }
  0x94   :  { %v39_v16 = vcvt.s32.f32 %v37_v15  ;;  %v38_v27 = vcvt.s32.f32 %v36_v20 }
  0x96   :  { %54 = vmin.xlane.f32.xlu1 %v53_v14  ;;  %40 = vmin.xlane.f32.xlu0 %v39_v16 }
 0x11b   :  { %v69_v21 = vpop.xlane.xlu1 %68 }
 0x11c   :  { %vm70_vm4 = vcmp.eq.f32.partialorder %v67_v12, %v69_v21  ;;  %v75_v31 = vcvt.f32.s32 %v69_v21 }
 0x11d   :  { %v71_v23 = vsel %vm70_vm4, %v66_v22, inf }
 0x11e   :  { %72 = vmin.xlane.f32.xlu0 %v71_v23  ;;  %v76_v35 = vshll.u32 %v75_v31, 16 }
 0x11f   :  { %v55_v24 = vpop.xlane.xlu1 %54  ;;  %v41_v25 = vpop.xlane.xlu0 %40 }
 0x120   :  { %vm56_vm5 = vcmp.eq.f32.partialorder %v53_v14, %v55_v24  ;;  %vm42_vm6 = vcmp.eq.f32.partialorder %v39_v16, %v41_v25  ;;  %v61_v33 = vcvt.f32.s32 %v55_v24  ;;  %v47_v36 = vcvt.f32.s32 %v41_v25 }
 0x121   :  { %v57_v28 = vsel %vm56_vm5, %v52_v26, inf  ;;  %v43_v29 = vsel %vm42_vm6, %v38_v27, inf }
 0x122   :  { %58 = vmin.xlane.f32.xlu0 %v57_v28  ;;  %44 = vmin.xlane.f32.xlu1 %v43_v29  ;;  %v62_v40 = vshll.u32 %v61_v33, 16  ;;  %v48_v43 = vshll.u32 %v47_v36, 16 }
 0x1a7   :  { %v73_v34 = vpop.xlane.xlu0 %72 }
 0x1a8   :  { %v74_v37 = vcvt.f32.s32 %v73_v34 }
 0x1aa   :  { %v77_v39 = vadd.s32 %v76_v35, %v74_v37 }
 0x1ab   :  { %v59_v41 = vpop.xlane.xlu0 %58  ;;  %v45_v42 = vpop.xlane.xlu1 %44 }
 0x1ac   :  { %vm95_vm8 = vcmp.eq.s32.totalorder %v77_v39, %v92_v38  ;;  %v60_v45 = vcvt.f32.s32 %v59_v41  ;;  %v46_v46 = vcvt.f32.s32 %v45_v42 }
 0x1ad   :  { %vm104_vm9 = vmand %vm89_vm7, %vm95_vm8 }
 0x1ae   :  { %v107_v49 = vsel %vm104_vm9, 1.0, %v123_v17  ;;  %v63_v50 = vadd.s32 %v62_v40, %v60_v45  ;;  %v49_v51 = vadd.s32 %v48_v43, %v46_v46 }
 0x1af   :  { %v113_v52 = vadd.f32 %v110_v44, %v107_v49 }
 0x1b0   :  { %vm94_vm10 = vcmp.eq.s32.totalorder %v63_v50, %v91_v47  ;;  %vm93_vm11 = vcmp.eq.s32.totalorder %v49_v51, %v90_v48 }
 0x1b1   :  { %117 = vst.msk [vmem:[%s191_s2 + $0x10] sm:$0xff] %vm15_vm3, %v113_v52  ;;  %v106_v55 = vsel %vm94_vm10, 1.0, %v123_v17  ;;  %v105_v56 = vsel %vm93_vm11, 1.0, %v123_v17 }
 0x1b2   :  { %v112_v57 = vadd.f32 %v109_v53, %v106_v55  ;;  %v111_v58 = vadd.f32 %v108_v54, %v105_v56 }
 0x1b4   :  { %116 = vst.msk [vmem:[%s191_s2 + $0x8] sm:$0xff] %vm15_vm3, %v112_v57  ;;  %115 = vst.msk [vmem:[%s191_s2] sm:$0xff] %vm15_vm3, %v111_v58 }

</bundles_post_ra>
